<compile_context>
chip_gen: v7x
topology: tpu7x:2x2x1
jax: 0.10.0
libtpu: 0.0.40
codegen_flags: <defaults>
</compile_context>

<pallas_src>
import functools

import jax
import jax.numpy as jnp
from jax.experimental import pallas as pl
from jax.experimental.pallas import tpu as pltpu


def _round_up(x: int, m: int) -> int:
    return ((x + m - 1) // m) * m


def _linear_kernel(x_ref, w_ref, o_ref):
    # Eval mode: dropout is identity -> pure matmul on the MXU.
    xb = x_ref[...].astype(jnp.bfloat16)
    o_ref[...] = jax.lax.dot_general(
        xb, w_ref[...],
        dimension_numbers=(((1,), (1,)), ((), ())),   # contract K of x with K of W
        preferred_element_type=jnp.float32,
    ).astype(o_ref.dtype)


def _dropout_linear_kernel(x_ref, m_ref, w_ref, o_ref):
    # Training mode: mask already contains the 1/(1-p) scaling (values 0.0 or 2.0).
    # Keep the elementwise math in f32 (v5e VPU has no bf16 ALU); cast once for the MXU.
    xb = (x_ref[...] * m_ref[...]).astype(jnp.bfloat16)
    o_ref[...] = jax.lax.dot_general(
        xb, w_ref[...],
        dimension_numbers=(((1,), (1,)), ((), ())),
        preferred_element_type=jnp.float32,
    ).astype(o_ref.dtype)


@functools.partial(jax.jit, static_argnames=("training",))
def classifier_forward(x, weight, *, key=None, training=False):
    """x: [batch, in_features] f32, weight: [n_class, in_features] f32 (torch layout)."""
    batch, in_features = x.shape
    n_class, k_w = weight.shape
    assert k_w == in_features

    # --- tiling --------------------------------------------------------------
    # Large batch tiles amortize the ~0.35us/step grid overhead; keep >= 2 blocks
    # along the (parallel) batch axis so v7x's two TensorCores both get work.
    bm = min(512, _round_up(max(batch // 2, 1), 8))
    bm = max(bm, 8)
    padded_batch = _round_up(batch, bm)
    # Lane-dense output: pad n_class up to a multiple of 128 so the writeback is
    # unmasked full-lane stores instead of masked partial stores.
    n_pad = _round_up(n_class, 128)

    x_p = x if padded_batch == batch else jnp.pad(x, ((0, padded_batch - batch), (0, 0)))
    w_p = weight if n_pad == n_class else jnp.pad(weight, ((0, n_pad - n_class), (0, 0)))
    w_p = w_p.astype(jnp.bfloat16)   # bf16 weight: MXU-native, half the HBM/VMEM bytes

    grid = (padded_batch // bm,)
    x_spec = pl.BlockSpec((bm, in_features), lambda i: (i, 0))
    m_spec = pl.BlockSpec((bm, in_features), lambda i: (i, 0))
    # Weight index_map is constant; for very large weights add pipeline_mode=pl.Buffered(1)
    # to drop the redundant second VMEM buffer.
    w_spec = pl.BlockSpec((n_pad, in_features), lambda i: (0, 0))
    o_spec = pl.BlockSpec((bm, n_pad), lambda i: (i, 0))

    # VMEM budget: double-buffered x (+mask) + weight (2 bufs) + double-buffered out,
    # with 2x headroom, capped at 48 MiB so it also fits v7x's 64 MiB VMEM.
    need = 2 * bm * in_features * 4 + 2 * n_pad * in_features * 2 + 2 * bm * n_pad * 4
    if training:
        need += 2 * bm * in_features * 4
    vmem_limit = int(min(max(2 * need, 16 << 20), 48 << 20))

    cparams = pltpu.CompilerParams(
        dimension_semantics=("parallel",),
        vmem_limit_bytes=vmem_limit,
    )
    out_shape = jax.ShapeDtypeStruct((padded_batch, n_pad), x.dtype)

    if training:
        # Dropout keep-mask (p=0.5), pre-scaled by 1/(1-p)=2, fused into the kernel.
        # TODO(synk): on a real-TPU training hot path, draw the mask in-kernel with
        # pltpu.prng_random_bits to avoid the extra mask HBM traffic (not used here
        # because it does not lower under the CPU/interpret checker).
        keep = jax.random.bernoulli(key, 0.5, shape=(padded_batch, in_features))
        mask = keep.astype(jnp.float32) * 2.0
        out = pl.pallas_call(
            _dropout_linear_kernel,
            out_shape=out_shape,
            grid=grid,
            in_specs=[x_spec, m_spec, w_spec],
            out_specs=o_spec,
            compiler_params=cparams,
        )(x_p, mask, w_p)
    else:
        out = pl.pallas_call(
            _linear_kernel,
            out_shape=out_shape,
            grid=grid,
            in_specs=[x_spec, w_spec],
            out_specs=o_spec,
            compiler_params=cparams,
        )(x_p, w_p)

    return out[:batch, :n_class]


if __name__ == "__main__":
    # Small shapes consistent with the module: batch=16, in_features=32, n_class=8.
    batch, in_features, n_class = 16, 32, 8

    key = jax.random.PRNGKey(0)
    kx, kw, kd = jax.random.split(key, 3)
    x = jax.random.normal(kx, (batch, in_features), dtype=jnp.float32)
    # Deterministic "Linear" weight (torch layout: [n_class, in_features]).
    weight = jax.random.normal(kw, (n_class, in_features), dtype=jnp.float32) * 0.1

    # Eval-mode forward (dropout is identity) — matches model.eval() in PyTorch.
    out = jax.block_until_ready(classifier_forward(x, weight, training=False))
    assert out.shape == (batch, n_class)

    # Reference: same bf16-operand / f32-accumulate matmul.
    ref = jnp.dot(
        x.astype(jnp.bfloat16), weight.T.astype(jnp.bfloat16),
        preferred_element_type=jnp.float32,
    )
    assert jnp.allclose(out, ref, atol=1e-3, rtol=1e-3)

    # Training path (stochastic dropout fused into the kernel) — just exercise it.
    out_train = jax.block_until_ready(
        classifier_forward(x, weight, key=kd, training=True)
    )
    assert out_train.shape == (batch, n_class)

    print("KERNEL_OK")
</pallas_src>

<mosaic_0001>
module attributes {stable_mosaic.version = 11 : i64} {
  func.func @_linear_kernel(%arg0: i32, %arg1: memref<8x32xf32, #tpu.memory_space<vmem>>, %arg2: memref<128x32xbf16, #tpu.memory_space<vmem>>, %arg3: memref<8x128xf32, #tpu.memory_space<vmem>>) attributes {dimension_semantics = [#tpu.dimension_semantics<parallel>], iteration_bounds = array<i64: 2>, scalar_prefetch = 0 : i64, scratch_operands = 0 : i64, tpu.core_type = #tpu.core_type<tc>, window_params = [{transform_indices = @transform_0, window_bounds = array<i64: 8, 32>}, {pipeline_mode = #tpu.pipeline_mode<synchronous>, transform_indices = @transform_1, window_bounds = array<i64: 128, 32>}, {transform_indices = @transform_2, window_bounds = array<i64: 8, 128>}]} {
    %c0 = arith.constant 0 : index
    %c0_0 = arith.constant 0 : index
    %0 = vector.load %arg1[%c0, %c0_0] : memref<8x32xf32, #tpu.memory_space<vmem>>, vector<8x32xf32>
    %1 = arith.truncf %0 : vector<8x32xf32> to vector<8x32xbf16>
    %c0_1 = arith.constant 0 : index
    %c0_2 = arith.constant 0 : index
    %2 = vector.load %arg2[%c0_1, %c0_2] : memref<128x32xbf16, #tpu.memory_space<vmem>>, vector<128x32xbf16>
    %cst = arith.constant dense<0.000000e+00> : vector<8x128xf32>
    %3 = tpu.matmul %1, %2, %cst {dimension_numbers = #tpu.dot_dimension_numbers<[1], [1], [0], [0], [0, 0, 1, 0], [], []>} : vector<8x32xbf16>, vector<128x32xbf16>, vector<8x128xf32> -> vector<8x128xf32>
    %c0_3 = arith.constant 0 : index
    %c0_4 = arith.constant 0 : index
    %4 = vector.load %arg3[%c0_3, %c0_4] : memref<8x128xf32, #tpu.memory_space<vmem>>, vector<8x128xf32>
    tpu.vector_store %arg3[%c0_3, %c0_4], %3 {strides = array<i32>} : memref<8x128xf32, #tpu.memory_space<vmem>>, vector<8x128xf32>,
    return
  }
  func.func @transform_0(%arg0: i32) -> (i32, i32) {
    %c0_i32 = arith.constant 0 : i32
    %c0_i32_0 = arith.constant 0 : i32
    return %arg0, %c0_i32 : i32, i32
  }
  func.func @transform_1(%arg0: i32) -> (i32, i32) {
    %c0_i32 = arith.constant 0 : i32
    %c0_i32_0 = arith.constant 0 : i32
    %c0_i32_1 = arith.constant 0 : i32
    return %c0_i32, %c0_i32_0 : i32, i32
  }
  func.func @transform_2(%arg0: i32) -> (i32, i32) {
    %c0_i32 = arith.constant 0 : i32
    %c0_i32_0 = arith.constant 0 : i32
    return %arg0, %c0_i32 : i32, i32
  }
}

</mosaic_0001>

<bundles_post_ra>
// kernel: classifier_forward.1
= control target key start
LH: loop header
LB: loop body
LE: loop exit
PB: predicated region body
PF: predicated region fallthrough
CT: control target
= control target key end

     0   :  { %s410_s9 = smov 0   ;;  %s464_s0 = inlined_call_operand.vmem [shape: f32[16,32], index: 0, kind: input, shape index: {}]   ;;  %s465_s1 = inlined_call_operand.vmem [shape: bf16[128,32], index: 1, kind: input, shape index: {}]   ;;  %s466_s2 = inlined_call_operand.vmem [shape: f32[16,128], index: 2, kind: output, shape index: {}]  }
   0x1 LB: > { %s320_s10 = sadd.s32 4294967295, %s391_s9   ;;  %p324_p0 = scmp.ge.s32.totalorder %s391_s9, 1  ;;  %s391_s9 = sphi %s410_s9, %s12_s9  }
   0x2   : > { %p111_p1 = scmp.lt.s32.totalorder %s391_s9, 3 }
   0x4   : > { %p112_p2 = pnand %p324_p0, %p111_p1 }
   0x5   : > { %v377_v0 = vld [vmem:[%s465_s1] sm:$0xff] (!%p112_p2)   ;;  %v393_v1 = vmov (!%p112_p2), 0.0   ;;  %vm198_vm0 = vcmask (!%p112_p2), 261120   ;;  %v378_v3 = vld [vmem:[%s465_s1 + $0x8] sm:$0xff] (!%p112_p2)   ;;  %vm394_vm1 = vmmov (!%p112_p2), 0   ;;  %v379_v5 = vld [vmem:[%s465_s1 + $0x10] sm:$0xff] (!%p112_p2)  }
   0x6   : > { %115 = sbr.rel (%p112_p2) target bundleno = 285 (0x11d), region = 28  ;;  %347 = vmatprep.subr.bf16.mxu0 (!%p112_p2), %v393_v1  ;;  %v203_v2 = vsel (!%p112_p2), %vm198_vm0, %v377_v0, 0  ;;  %v206_v4 = vsel (!%p112_p2), %vm198_vm0, %v378_v3, 0  ;;  %363 = vmatprep.mubr.msk.bf16.mxu0 (!%p112_p2), %vm394_vm1, %v393_v1  ;;  %v209_v6 = vsel (!%p112_p2), %vm198_vm0, %v379_v5, 0  ;;  %v380_v7 = vld [vmem:[%s465_s1 + $0x18] sm:$0xff] (!%p112_p2)   ;;  %v381_v9 = vld [vmem:[%s465_s1 + $0x20] sm:$0xff] (!%p112_p2)  }
   0x7   : > { %348 = vmatpush3.bf16.xpose.msra.mxu0 (!%p112_p2), %v203_v2  ;;  %v212_v8 = vsel (!%p112_p2), %vm198_vm0, %v380_v7, 0  ;;  %v215_v10 = vsel (!%p112_p2), %vm198_vm0, %v381_v9, 0  ;;  %v382_v11 = vld [vmem:[%s465_s1 + $0x28] sm:$0xff] (!%p112_p2)   ;;  %v383_v13 = vld [vmem:[%s465_s1 + $0x30] sm:$0xff] (!%p112_p2)   ;;  %p131_p3 = scmp.lt.s32.totalorder (!%p112_p2), %s320_s10, 1  ;;  %v384_v15 = vld [vmem:[%s465_s1 + $0x38] sm:$0xff] (!%p112_p2)  }
   0x8   : > { %349 = vmatprep.subr.bf16.mxu0 (!%p112_p2), %v393_v1  ;;  %v218_v12 = vsel (!%p112_p2), %vm198_vm0, %v382_v11, 0  ;;  %v221_v14 = vsel (!%p112_p2), %vm198_vm0, %v383_v13, 0  ;;  %v224_v16 = vsel (!%p112_p2), %vm198_vm0, %v384_v15, 0 }
   0xd   : > { %s468_s10 = smov (!%p131_p3, %s320_s10), 1 }
   0xe   : > { %s325_s27 = sshll.u32 %s468_s10, 3 }
   0xf   : > { %350 = vmatpush3.bf16.xpose.msra.mxu0 %v206_v4  ;;  %s134_s30 = scalar_lea.vmem %s464_s0, %s325_s27  ;;  %s138_s5 = scalar_lea.vmem %s466_s2, %s325_s27 }
  0x10   : > { %351 = vmatprep.subr.bf16.mxu0 %v393_v1  ;;  %v140_v17 = vld [vmem:[%s134_s30] sm:$0xff] }
  0x11   : > { %v141_v18 = vpack.c.bf16 %v140_v17, %v140_v17 }
  0x17   : > { %352 = vmatpush3.bf16.xpose.msra.mxu0 %v209_v6 }
  0x18   : > { %353 = vmatprep.subr.bf16.mxu0 %v393_v1 }
  0x1f   : > { %354 = vmatpush3.bf16.xpose.msra.mxu0 %v212_v8 }
  0x20   : > { %355 = vmatprep.subr.bf16.mxu0 %v393_v1 }
  0x27   : > { %356 = vmatpush3.bf16.xpose.msra.mxu0 %v215_v10 }
  0x28   : > { %357 = vmatprep.subr.bf16.mxu0 %v393_v1 }
  0x2f   : > { %358 = vmatpush3.bf16.xpose.msra.mxu0 %v218_v12 }
  0x30   : > { %359 = vmatprep.subr.bf16.mxu0 %v393_v1 }
  0x37   : > { %360 = vmatpush3.bf16.xpose.msra.mxu0 %v221_v14 }
  0x38   : > { %361 = vmatprep.subr.bf16.mxu0 %v393_v1 }
  0x3f   : > { %362 = vmatpush3.bf16.xpose.msra.mxu0 %v224_v16 }
  0x46   : > { %364 = vmatmul.mubr.msk.bf16.vlgmr.msra.gmra.mrb[0].mxu0 %vm198_vm0, %v141_v18 }
 0x119   : > { %v260_v19 = vpop.f32.mrb[0].mxu0 }
 0x11a   : > { %266 = vst [vmem:[%s138_s5] sm:$0xff] %v260_v19  ;;  %v365_v20 = vpop.f32.mrb[1].mxu0 }
 0x11b   : > { %v263_v21 = vpop.f32.mrb[2].mxu0 }
 0x11c   : > { %v366_v22 = vpop.f32.mrb[3].mxu0 }
 0x11d PF: > { %s12_s9 = sadd.s32 1, %s391_s9  }
 0x11e   : > { %p9_p4 = scmp.ge.s32.totalorder %s12_s9, 4  }
 0x120   :  { %11 = sbr.rel (!%p9_p4) target bundleno = 1 (0x1), region = 58 }

</bundles_post_ra>
